<compile_context>
chip_gen: v5e
topology: v5e:2x2
jax: 0.10.0
libtpu: 0.0.40
codegen_flags: <defaults>
</compile_context>

<pallas_src>
import functools

import jax
import jax.numpy as jnp
from jax.experimental import pallas as pl
from jax.experimental.pallas import tpu as pltpu


def _round_up(n, m):
    return ((n + m - 1) // m) * m


def _reinforce_kernel(x_ref, p1_ref, p2_ref, out_ref, *, n_obs, hidden):
    # x_ref:  (TB, n_obs)          -- one batch tile
    # p1_ref: (n_obs+1, H)         -- [w1_t ; b1], VMEM-resident across tiles
    # p2_ref: (H+1, A)             -- [w2_t ; b2], VMEM-resident across tiles
    x = x_ref[...]

    w1 = p1_ref[:n_obs, :]          # (n_obs, H)
    b1 = p1_ref[n_obs:, :]          # (1, H)
    h = jnp.dot(x, w1, preferred_element_type=jnp.float32) + b1
    # dropout: identity in eval / inference mode.
    # TODO(synk): training-mode dropout (pltpu.prng_seed + Bernoulli mask / (1-p)) not wired in.
    h = jnp.maximum(h, 0.0)         # ReLU

    w2 = p2_ref[:hidden, :]         # (H, A)
    b2 = p2_ref[hidden:, :]         # (1, A)
    logits = jnp.dot(h, w2, preferred_element_type=jnp.float32) + b2

    # Numerically-stable softmax over the action dimension.
    m = jnp.max(logits, axis=-1, keepdims=True)
    e = jnp.exp(logits - m)
    denom = jnp.sum(e, axis=-1, keepdims=True)
    out_ref[...] = (e * pl.reciprocal(denom, approx=False)).astype(out_ref.dtype)


@functools.partial(jax.jit, static_argnames=("block_b",))
def mc_reinforce_forward(x, p1, p2, *, block_b=256):
    """x: (B, n_obs) f32; p1: (n_obs+1, H) = [w1_t; b1]; p2: (H+1, A) = [w2_t; b2]."""
    B, n_obs = x.shape
    hidden = p1.shape[1]
    A = p2.shape[1]
    assert p1.shape[0] == n_obs + 1
    assert p2.shape[0] == hidden + 1

    # Batch tile: multiple of 8 sublanes, no larger than (padded) B.
    tb = min(_round_up(block_b, 8), _round_up(B, 8))
    Bp = _round_up(B, tb)
    if Bp != B:
        x = jnp.pad(x, ((0, Bp - B), (0, 0)))

    kernel = functools.partial(_reinforce_kernel, n_obs=n_obs, hidden=hidden)

    probs = pl.pallas_call(
        kernel,
        out_shape=jax.ShapeDtypeStruct((Bp, A), jnp.float32),
        grid=(Bp // tb,),
        in_specs=[
            pl.BlockSpec((tb, n_obs), lambda i: (i, 0)),          # streamed activations
            pl.BlockSpec((n_obs + 1, hidden), lambda i: (0, 0)),  # resident weights
            pl.BlockSpec((hidden + 1, A), lambda i: (0, 0)),      # resident weights
        ],
        out_specs=pl.BlockSpec((tb, A), lambda i: (i, 0)),
        compiler_params=pltpu.CompilerParams(
            dimension_semantics=("parallel",),
        ),
    )(x, p1, p2)

    return probs[:B]


def init_params(key, n_observations, hidden_size, n_actions):
    """PyTorch-style uniform(-1/sqrt(fan_in), 1/sqrt(fan_in)) init, packed for the kernel."""
    k1, k2, k3, k4 = jax.random.split(key, 4)
    lim1 = 1.0 / float(n_observations) ** 0.5
    lim2 = 1.0 / float(hidden_size) ** 0.5
    # Stored already transposed to (in, out).
    w1_t = jax.random.uniform(k1, (n_observations, hidden_size), jnp.float32, -lim1, lim1)
    b1 = jax.random.uniform(k2, (1, hidden_size), jnp.float32, -lim1, lim1)
    w2_t = jax.random.uniform(k3, (hidden_size, n_actions), jnp.float32, -lim2, lim2)
    b2 = jax.random.uniform(k4, (1, n_actions), jnp.float32, -lim2, lim2)
    # Pack weight+bias into single slabs -> 2 parameter DMAs instead of 4.
    p1 = jnp.concatenate([w1_t, b1], axis=0)   # (n_obs+1, H)
    p2 = jnp.concatenate([w2_t, b2], axis=0)   # (H+1,   A)
    return p1, p2


def reference_forward(x, p1, p2):
    w1_t, b1 = p1[:-1, :], p1[-1:, :]
    w2_t, b2 = p2[:-1, :], p2[-1:, :]
    h = jnp.maximum(x @ w1_t + b1, 0.0)
    logits = h @ w2_t + b2
    return jax.nn.softmax(logits, axis=-1)


if __name__ == "__main__":
    key = jax.random.PRNGKey(0)
    n_observations, hidden_size, n_actions = 4, 32, 2   # CartPole-scale MLP
    batch = 256                                          # amortize launch/DMA cost

    kx, kp = jax.random.split(key)
    x = jax.random.normal(kx, (batch, n_observations), jnp.float32)
    p1, p2 = init_params(kp, n_observations, hidden_size, n_actions)

    probs = mc_reinforce_forward(x, p1, p2, block_b=128)  # grid of 2 batch tiles
    probs = jax.block_until_ready(probs)

    ref = reference_forward(x, p1, p2)
    assert probs.shape == (batch, n_actions)
    assert jnp.allclose(probs, ref, atol=1e-5, rtol=1e-5)
    assert jnp.allclose(jnp.sum(probs, axis=-1), 1.0, atol=1e-5)

    # Also exercise a non-tile-aligned small batch (padding path).
    small = mc_reinforce_forward(x[:5], p1, p2, block_b=128)
    small = jax.block_until_ready(small)
    assert small.shape == (5, n_actions)
    assert jnp.allclose(small, ref[:5], atol=1e-5, rtol=1e-5)

    print("KERNEL_OK")
</pallas_src>

<mosaic_0001>
module attributes {stable_mosaic.version = 11 : i64} {
  func.func @_reinforce_kernel(%arg0: i32, %arg1: memref<128x4xf32, #tpu.memory_space<vmem>>, %arg2: memref<5x32xf32, #tpu.memory_space<vmem>>, %arg3: memref<33x2xf32, #tpu.memory_space<vmem>>, %arg4: memref<128x2xf32, #tpu.memory_space<vmem>>) attributes {dimension_semantics = [#tpu.dimension_semantics<parallel>], iteration_bounds = array<i64: 2>, scalar_prefetch = 0 : i64, scratch_operands = 0 : i64, tpu.core_type = #tpu.core_type<tc>, window_params = [{transform_indices = @transform_0, window_bounds = array<i64: 128, 4>}, {pipeline_mode = #tpu.pipeline_mode<synchronous>, transform_indices = @transform_1, window_bounds = array<i64: 5, 32>}, {pipeline_mode = #tpu.pipeline_mode<synchronous>, transform_indices = @transform_2, window_bounds = array<i64: 33, 2>}, {transform_indices = @transform_3, window_bounds = array<i64: 128, 2>}]} {
    %c0 = arith.constant 0 : index
    %c0_0 = arith.constant 0 : index
    %0 = vector.load %arg1[%c0, %c0_0] : memref<128x4xf32, #tpu.memory_space<vmem>>, vector<128x4xf32>
    %c0_1 = arith.constant 0 : index
    %c0_2 = arith.constant 0 : index
    %1 = vector.load %arg2[%c0_1, %c0_2] : memref<5x32xf32, #tpu.memory_space<vmem>>, vector<4x32xf32>
    %c4 = arith.constant 4 : index
    %c0_3 = arith.constant 0 : index
    %2 = vector.load %arg2[%c4, %c0_3] : memref<5x32xf32, #tpu.memory_space<vmem>>, vector<1x32xf32>
    %cst = arith.constant dense<0.000000e+00> : vector<128x32xf32>
    %3 = tpu.matmul %0, %1, %cst {dimension_numbers = #tpu.dot_dimension_numbers<[1], [0], [0], [1], [0, 0, 1, 1], [], []>} : vector<128x4xf32>, vector<4x32xf32>, vector<128x32xf32> -> vector<128x32xf32>
    %4 = vector.broadcast %2 : vector<1x32xf32> to vector<128x32xf32>
    %5 = arith.addf %3, %4 : vector<128x32xf32>
    %cst_4 = arith.constant 0.000000e+00 : f32
    %6 = vector.broadcast %cst_4 : f32 to vector<128x32xf32>
    %7 = arith.maximumf %5, %6 : vector<128x32xf32>
    %c0_5 = arith.constant 0 : index
    %c0_6 = arith.constant 0 : index
    %8 = vector.load %arg3[%c0_5, %c0_6] : memref<33x2xf32, #tpu.memory_space<vmem>>, vector<32x2xf32>
    %c32 = arith.constant 32 : index
    %c0_7 = arith.constant 0 : index
    %9 = vector.load %arg3[%c32, %c0_7] : memref<33x2xf32, #tpu.memory_space<vmem>>, vector<1x2xf32>
    %cst_8 = arith.constant dense<0.000000e+00> : vector<128x2xf32>
    %10 = tpu.matmul %7, %8, %cst_8 {dimension_numbers = #tpu.dot_dimension_numbers<[1], [0], [0], [1], [0, 0, 1, 1], [], []>} : vector<128x32xf32>, vector<32x2xf32>, vector<128x2xf32> -> vector<128x2xf32>
    %11 = vector.broadcast %9 : vector<1x2xf32> to vector<128x2xf32>
    %12 = arith.addf %10, %11 : vector<128x2xf32>
    %cst_9 = arith.constant dense<0xFF800000> : vector<128xf32>
    %13 = vector.multi_reduction <maximumf>, %12, %cst_9 [1] : vector<128x2xf32> to vector<128xf32>
    %14 = vector.shape_cast %13 : vector<128xf32> to vector<128x1xf32>
    %15 = vector.broadcast %14 : vector<128x1xf32> to vector<128x2xf32>
    %16 = arith.subf %12, %15 : vector<128x2xf32>
    %17 = math.exp %16 : vector<128x2xf32>
    %cst_10 = arith.constant dense<0.000000e+00> : vector<128xf32>
    %18 = vector.multi_reduction <add>, %17, %cst_10 [1] : vector<128x2xf32> to vector<128xf32>
    %19 = vector.shape_cast %18 : vector<128xf32> to vector<128x1xf32>
    %20 = tpu.reciprocal %19 : vector<128x1xf32> -> vector<128x1xf32>
    %21 = vector.broadcast %20 : vector<128x1xf32> to vector<128x2xf32>
    %22 = arith.mulf %17, %21 : vector<128x2xf32>
    %c0_11 = arith.constant 0 : index
    %c0_12 = arith.constant 0 : index
    %23 = vector.load %arg4[%c0_11, %c0_12] : memref<128x2xf32, #tpu.memory_space<vmem>>, vector<128x2xf32>
    tpu.vector_store %arg4[%c0_11, %c0_12], %22 {strides = array<i32>} : memref<128x2xf32, #tpu.memory_space<vmem>>, vector<128x2xf32>,
    return
  }
  func.func @transform_0(%arg0: i32) -> (i32, i32) {
    %c0_i32 = arith.constant 0 : i32
    %c0_i32_0 = arith.constant 0 : i32
    return %arg0, %c0_i32 : i32, i32
  }
  func.func @transform_1(%arg0: i32) -> (i32, i32) {
    %c0_i32 = arith.constant 0 : i32
    %c0_i32_0 = arith.constant 0 : i32
    %c0_i32_1 = arith.constant 0 : i32
    return %c0_i32, %c0_i32_0 : i32, i32
  }
  func.func @transform_2(%arg0: i32) -> (i32, i32) {
    %c0_i32 = arith.constant 0 : i32
    %c0_i32_0 = arith.constant 0 : i32
    %c0_i32_1 = arith.constant 0 : i32
    return %c0_i32, %c0_i32_0 : i32, i32
  }
  func.func @transform_3(%arg0: i32) -> (i32, i32) {
    %c0_i32 = arith.constant 0 : i32
    %c0_i32_0 = arith.constant 0 : i32
    return %arg0, %c0_i32 : i32, i32
  }
}

</mosaic_0001>

<bundles_post_ra>
// kernel: mc_reinforce_forward.1
= control target key start
LH: loop header
LB: loop body
LE: loop exit
PB: predicated region body
PF: predicated region fallthrough
CT: control target
= control target key end

     0   :  { %s1055_s12 = smov 0   ;;  %s1376_s0 = inlined_call_operand.vmem [shape: f32[256,4], index: 0, kind: input, shape index: {}]   ;;  %s1377_s1 = inlined_call_operand.vmem [shape: f32[5,32], index: 1, kind: input, shape index: {}]   ;;  %s1378_s2 = inlined_call_operand.vmem [shape: f32[33,2], index: 2, kind: input, shape index: {}]   ;;  %s1379_s3 = inlined_call_operand.vmem [shape: f32[256,2], index: 3, kind: output, shape index: {}]  }
   0x1 LB: > { %s904_s13 = sadd.s32 4294967295, %s1033_s12   ;;  %p908_p0 = scmp.ge.s32.totalorder %s1033_s12, 1  ;;  %s1033_s12 = sphi %s1055_s12, %s13_s12  }
   0x2   : > { %p138_p1 = scmp.lt.s32.totalorder %s1033_s12, 3 }
   0x4   : > { %p139_p2 = pnand %p908_p0, %p138_p1 }
   0x5   : > { %s909_s16 = sshll.u32 (!%p139_p2), %s904_s13, 4 }
   0x6   : > { %142 = sbr.rel (%p139_p2) target bundleno = 664 (0x298), region = 32  ;;  %p163_p3 = scmp.lt.s32.totalorder (!%p139_p2), %s909_s16, 31 }
   0xb   : > { %v190_v0 = vld [vmem:[%s1377_s1] sm:$0xf]  ;;  %vm242_vm0 = vcmask 1043456   ;;  %s1381_s16 = smov (!%p163_p3, %s909_s16), 31  ;;  %vm193_vm1 = vcmask 31744   ;;  %v330_v11 = vld [vmem:[%s1378_s2 + $0x18] sm:$0xff] }
   0xc   : > { %913 = vmatpush.msk.msra.mxu0 %vm242_vm0, %v190_v0  ;;  %948 = vmatpush.msk.msra.mxu3 %vm242_vm0, %v190_v0  ;;  %s910_s17 = sshll.u32 %s1381_s16, 3  ;;  %v329_v18 = vld [vmem:[%s1378_s2 + $0x10] sm:$0xff]  ;;  %v328_v19 = vld [vmem:[%s1378_s2 + $0x8] sm:$0xff]  ;;  %v327_v20 = vld [vmem:[%s1378_s2] sm:$0xff]  ;;  %vm333_vm2 = vcmask 261120   ;;  %vm447_vm3 = vcmask 15360  }
   0xd   : > { %s1074_s20 = scalar_lea.vmem %s1376_s0, %s910_s17  ;;  %394 = vmatpush.msra.mxu1 %v330_v11  ;;  %949 = vmatpush.msra.mxu2 %v330_v11  ;;  %v1123_v21 = vld [vmem:[%s1377_s1 + $0x4] ss:$0 sm:$0xff]  ;;  %s1323_s8 = scalar_lea.vmem %s1379_s3, %s910_s17 }
   0xe   : > { %v174_v1 = vld [vmem:[%s1074_s20] sm:$0xff]  ;;  %v175_v2 = vld [vmem:[%s1074_s20 + $0x8] sm:$0xff]  ;;  %v176_v3 = vld [vmem:[%s1074_s20 + $0x10] sm:$0xff] }
   0xf   : > { %914 = vmatmul.msk.f32.vlgmr.msra.gmra.mxu0 %vm193_vm1, %v174_v1  ;;  %v177_v4 = vld [vmem:[%s1074_s20 + $0x18] sm:$0xff]  ;;  %v178_v5 = vld [vmem:[%s1074_s20 + $0x20] sm:$0xff]  ;;  %v183_v6 = vld [vmem:[%s1074_s20 + $0x48] sm:$0xff]  ;;  %395 = vmatpush.msra.mxu1 %v329_v18 }
  0x10   : > { %923 = vmatmul.msk.f32.vlgmr.msra.gmra.mxu3 %vm193_vm1, %v183_v6  ;;  %v179_v7 = vld [vmem:[%s1074_s20 + $0x28] sm:$0xff]  ;;  %v184_v8 = vld [vmem:[%s1074_s20 + $0x50] sm:$0xff]  ;;  %v185_v10 = vld [vmem:[%s1074_s20 + $0x58] sm:$0xff]  ;;  %950 = vmatpush.msra.mxu2 %v329_v18 }
  0x11   : > { %v180_v9 = vld [vmem:[%s1074_s20 + $0x30] sm:$0xff]  ;;  %v181_v12 = vld [vmem:[%s1074_s20 + $0x38] sm:$0xff]  ;;  %v186_v13 = vld [vmem:[%s1074_s20 + $0x60] sm:$0xff]  ;;  %396 = vmatpush.msra.mxu1 %v328_v19 }
  0x12   : > { %v182_v14 = vld [vmem:[%s1074_s20 + $0x40] sm:$0xff]  ;;  %v187_v15 = vld [vmem:[%s1074_s20 + $0x68] sm:$0xff]  ;;  %v188_v16 = vld [vmem:[%s1074_s20 + $0x70] sm:$0xff]  ;;  %951 = vmatpush.msra.mxu2 %v328_v19 }
  0x13   : > { %v189_v17 = vld [vmem:[%s1074_s20 + $0x78] sm:$0xff]  ;;  %397 = vmatpush.msra.mxu1 %v327_v20  ;;  %v1160_v6 = vld [vmem:[%s1378_s2 + $0x20] ss:$0 sm:$0xff] }
  0x14   : > { %952 = vmatpush.msra.mxu2 %v327_v20 }
  0x17   : > { %915 = vmatmul.msk.f32.gmra.mxu0 %vm193_vm1, %v175_v2 }
  0x18   : > { %924 = vmatmul.msk.f32.gmra.mxu3 %vm193_vm1, %v184_v8 }
  0x1f   : > { %916 = vmatmul.msk.f32.gmra.mxu0 %vm193_vm1, %v176_v3 }
  0x20   : > { %925 = vmatmul.msk.f32.gmra.mxu3 %vm193_vm1, %v185_v10 }
  0x27   : > { %917 = vmatmul.msk.f32.gmra.mxu0 %vm193_vm1, %v177_v4 }
  0x28   : > { %926 = vmatmul.msk.f32.gmra.mxu3 %vm193_vm1, %v186_v13 }
  0x2f   : > { %918 = vmatmul.msk.f32.gmra.mxu0 %vm193_vm1, %v178_v5 }
  0x30   : > { %927 = vmatmul.msk.f32.gmra.mxu3 %vm193_vm1, %v187_v15 }
  0x37   : > { %919 = vmatmul.msk.f32.gmra.mxu0 %vm193_vm1, %v179_v7 }
  0x38   : > { %928 = vmatmul.msk.f32.gmra.mxu3 %vm193_vm1, %v188_v16 }
  0x3f   : > { %920 = vmatmul.msk.f32.gmra.mxu0 %vm193_vm1, %v180_v9 }
  0x40   : > { %929 = vmatmul.msk.f32.gmra.mxu3 %vm193_vm1, %v189_v17 }
  0x47   : > { %921 = vmatmul.msk.f32.gmra.mxu0 %vm193_vm1, %v181_v12 }
  0x4f   : > { %922 = vmatmul.msk.f32.gmra.mxu0 %vm193_vm1, %v182_v14 }
  0x8c   : > { %v263_v22 = vpop.f32.mrf.mxu0 }
  0x8d   : > { %v264_v23 = vadd.f32 %v1123_v21, %v263_v22 }
  0x8f   : > { %v311_v24 = vmax.f32 %v264_v23, 0.0 }
  0x91   : > { %930 = vmatmul.msk.f32.vlgmr.msra.gmra.mxu1 %vm333_vm2, %v311_v24 }
  0x93   : > { %v290_v43 = vpop.f32.mrf.mxu3 }
  0x94   : > { %v266_v25 = vpop.f32.mrf.mxu0  ;;  %v291_v51 = vadd.f32 %v1123_v21, %v290_v43 }
  0x95   : > { %v267_v26 = vadd.f32 %v1123_v21, %v266_v25 }
  0x96   : > { %v320_v52 = vmax.f32 %v291_v51, 0.0 }
  0x97   : > { %v312_v27 = vmax.f32 %v267_v26, 0.0 }
  0x99   : > { %931 = vmatmul.msk.f32.gmra.mxu1 %vm333_vm2, %v312_v27 }
  0x9b   : > { %v293_v48 = vpop.f32.mrf.mxu3 }
  0x9c   : > { %v269_v28 = vpop.f32.mrf.mxu0  ;;  %v294_v54 = vadd.f32 %v1123_v21, %v293_v48 }
  0x9d   : > { %v270_v29 = vadd.f32 %v1123_v21, %v269_v28 }
  0x9e   : > { %v321_v55 = vmax.f32 %v294_v54, 0.0 }
  0x9f   : > { %v313_v30 = vmax.f32 %v270_v29, 0.0 }
  0xa1   : > { %932 = vmatmul.msk.f32.gmra.mxu1 %vm333_vm2, %v313_v30 }
  0xa3   : > { %v296_v53 = vpop.f32.mrf.mxu3 }
  0xa4   : > { %v272_v31 = vpop.f32.mrf.mxu0  ;;  %v297_v57 = vadd.f32 %v1123_v21, %v296_v53 }
  0xa5   : > { %v273_v32 = vadd.f32 %v1123_v21, %v272_v31 }
  0xa6   : > { %v322_v58 = vmax.f32 %v297_v57, 0.0 }
  0xa7   : > { %v314_v33 = vmax.f32 %v273_v32, 0.0 }
  0xa9   : > { %933 = vmatmul.msk.f32.gmra.mxu1 %vm333_vm2, %v314_v33 }
  0xab   : > { %v299_v56 = vpop.f32.mrf.mxu3 }
  0xac   : > { %v275_v34 = vpop.f32.mrf.mxu0  ;;  %v300_v59 = vadd.f32 %v1123_v21, %v299_v56 }
  0xad   : > { %v276_v35 = vadd.f32 %v1123_v21, %v275_v34 }
  0xae   : > { %v323_v61 = vmax.f32 %v300_v59, 0.0 }
  0xaf   : > { %v315_v36 = vmax.f32 %v276_v35, 0.0 }
  0xb1   : > { %934 = vmatmul.msk.f32.gmra.mxu1 %vm333_vm2, %v315_v36 }
  0xb3   : > { %v302_v60 = vpop.f32.mrf.mxu3 }
  0xb4   : > { %v278_v37 = vpop.f32.mrf.mxu0  ;;  %v303_v62 = vadd.f32 %v1123_v21, %v302_v60 }
  0xb5   : > { %v279_v38 = vadd.f32 %v1123_v21, %v278_v37 }
  0xb6   : > { %v324_v0 = vmax.f32 %v303_v62, 0.0 }
  0xb7   : > { %v316_v39 = vmax.f32 %v279_v38, 0.0 }
  0xb9   : > { %935 = vmatmul.msk.f32.gmra.mxu1 %vm333_vm2, %v316_v39 }
  0xbb   : > { %v305_v63 = vpop.f32.mrf.mxu3 }
  0xbc   : > { %v281_v40 = vpop.f32.mrf.mxu0  ;;  %v306_v1 = vadd.f32 %v1123_v21, %v305_v63 }
  0xbd   : > { %v282_v41 = vadd.f32 %v1123_v21, %v281_v40 }
  0xbe   : > { %v325_v2 = vmax.f32 %v306_v1, 0.0 }
  0xbf   : > { %v317_v42 = vmax.f32 %v282_v41, 0.0 }
  0xc1   : > { %936 = vmatmul.msk.f32.gmra.mxu1 %vm333_vm2, %v317_v42 }
  0xc3   : > { %v308_v3 = vpop.f32.mrf.mxu3 }
  0xc4   : > { %v284_v44 = vpop.f32.mrf.mxu0  ;;  %v309_v4 = vadd.f32 %v1123_v21, %v308_v3 }
  0xc5   : > { %v285_v45 = vadd.f32 %v1123_v21, %v284_v44 }
  0xc6   : > { %v326_v5 = vmax.f32 %v309_v4, 0.0 }
  0xc7   : > { %v318_v46 = vmax.f32 %v285_v45, 0.0 }
  0xc9   : > { %937 = vmatmul.msk.f32.gmra.mxu1 %vm333_vm2, %v318_v46 }
  0xcc   : > { %v287_v47 = vpop.f32.mrf.mxu0 }
  0xcd   : > { %v288_v49 = vadd.f32 %v1123_v21, %v287_v47 }
  0xcf   : > { %v319_v50 = vmax.f32 %v288_v49, 0.0 }
  0xd1   : > { %938 = vmatmul.msk.f32.vlgmr.msra.gmra.mxu2 %vm333_vm2, %v319_v50 }
  0xd9   : > { %939 = vmatmul.msk.f32.gmra.mxu2 %vm333_vm2, %v320_v52 }
  0xe1   : > { %940 = vmatmul.msk.f32.gmra.mxu2 %vm333_vm2, %v321_v55 }
  0xe9   : > { %941 = vmatmul.msk.f32.gmra.mxu2 %vm333_vm2, %v322_v58 }
  0xf1   : > { %942 = vmatmul.msk.f32.gmra.mxu2 %vm333_vm2, %v323_v61 }
  0xf9   : > { %943 = vmatmul.msk.f32.gmra.mxu2 %vm333_vm2, %v324_v0 }
 0x101   : > { %944 = vmatmul.msk.f32.gmra.mxu2 %vm333_vm2, %v325_v2 }
 0x109   : > { %945 = vmatmul.msk.f32.gmra.mxu2 %vm333_vm2, %v326_v5 }
 0x10e   : > { %v399_v7 = vpop.f32.mrf.mxu1 }
 0x10f   : > { %v400_v8 = vadd.f32 %v1160_v6, %v399_v7 }
 0x111   : > { %v448_v9 = vsel %vm447_vm3, %v400_v8, -inf }
 0x112   : > { %449 = vmax.xlane.f32.xlu0 %v448_v9 }
 0x116   : > { %v402_v10 = vpop.f32.mrf.mxu1 }
 0x117   : > { %v1165_v11 = vadd.f32 %v1160_v6, %v402_v10 }
 0x119   : > { %v451_v12 = vsel %vm447_vm3, %v1165_v11, -inf }
 0x11a   : > { %452 = vmax.xlane.f32.xlu0 %v451_v12 }
 0x11e   : > { %v405_v13 = vpop.f32.mrf.mxu1 }
 0x11f   : > { %v1170_v14 = vadd.f32 %v1160_v6, %v405_v13 }
 0x121   : > { %v454_v15 = vsel %vm447_vm3, %v1170_v14, -inf }
 0x122   : > { %455 = vmax.xlane.f32.xlu1 %v454_v15 }
 0x126   : > { %v408_v16 = vpop.f32.mrf.mxu1 }
 0x127   : > { %v1175_v17 = vadd.f32 %v1160_v6, %v408_v16 }
 0x129   : > { %v457_v18 = vsel %vm447_vm3, %v1175_v17, -inf }
 0x12a   : > { %458 = vmax.xlane.f32.xlu1 %v457_v18 }
 0x12e   : > { %v411_v19 = vpop.f32.mrf.mxu1 }
 0x12f   : > { %v1180_v20 = vadd.f32 %v1160_v6, %v411_v19 }
 0x131   : > { %v460_v21 = vsel %vm447_vm3, %v1180_v20, -inf }
 0x132   : > { %461 = vmax.xlane.f32.xlu2 %v460_v21 }
 0x136   : > { %v414_v22 = vpop.f32.mrf.mxu1 }
 0x137   : > { %v1185_v23 = vadd.f32 %v1160_v6, %v414_v22 }
 0x139   : > { %v463_v24 = vsel %vm447_vm3, %v1185_v23, -inf }
 0x13a   : > { %464 = vmax.xlane.f32.xlu2 %v463_v24 }
 0x13e   : > { %v417_v25 = vpop.f32.mrf.mxu1 }
 0x13f   : > { %v1190_v26 = vadd.f32 %v1160_v6, %v417_v25 }
 0x141   : > { %v466_v27 = vsel %vm447_vm3, %v1190_v26, -inf }
 0x142   : > { %467 = vmax.xlane.f32.xlu0 %v466_v27 }
 0x146   : > { %v420_v28 = vpop.f32.mrf.mxu1 }
 0x147   : > { %v1195_v29 = vadd.f32 %v1160_v6, %v420_v28 }
 0x149   : > { %v469_v30 = vsel %vm447_vm3, %v1195_v29, -inf }
 0x14a   : > { %470 = vmax.xlane.f32.xlu1 %v469_v30 }
 0x154   : > { %v423_v31 = vpop.f32.mrf.mxu2 }
 0x155   : > { %v1200_v32 = vadd.f32 %v1160_v6, %v423_v31 }
 0x157   : > { %v472_v33 = vsel %vm447_vm3, %v1200_v32, -inf }
 0x158   : > { %473 = vmax.xlane.f32.xlu2 %v472_v33 }
 0x15c   : > { %v426_v34 = vpop.f32.mrf.mxu2 }
 0x15d   : > { %v1205_v35 = vadd.f32 %v1160_v6, %v426_v34 }
 0x15f   : > { %v475_v36 = vsel %vm447_vm3, %v1205_v35, -inf }
 0x160   : > { %476 = vmax.xlane.f32.xlu0 %v475_v36 }
 0x164   : > { %v429_v37 = vpop.f32.mrf.mxu2 }
 0x165   : > { %v1210_v38 = vadd.f32 %v1160_v6, %v429_v37 }
 0x167   : > { %v478_v39 = vsel %vm447_vm3, %v1210_v38, -inf }
 0x168   : > { %479 = vmax.xlane.f32.xlu1 %v478_v39 }
 0x16c   : > { %v432_v40 = vpop.f32.mrf.mxu2 }
 0x16d   : > { %v1215_v41 = vadd.f32 %v1160_v6, %v432_v40 }
 0x16f   : > { %v481_v42 = vsel %vm447_vm3, %v1215_v41, -inf }
 0x170   : > { %482 = vmax.xlane.f32.xlu2 %v481_v42 }
 0x174   : > { %v435_v43 = vpop.f32.mrf.mxu2 }
 0x175   : > { %v1220_v44 = vadd.f32 %v1160_v6, %v435_v43 }
 0x177   : > { %v484_v45 = vsel %vm447_vm3, %v1220_v44, -inf }
 0x178   : > { %485 = vmax.xlane.f32.xlu0 %v484_v45 }
 0x17c   : > { %v438_v46 = vpop.f32.mrf.mxu2 }
 0x17d   : > { %v1225_v47 = vadd.f32 %v1160_v6, %v438_v46 }
 0x17f   : > { %v487_v48 = vsel %vm447_vm3, %v1225_v47, -inf }
 0x180   : > { %488 = vmax.xlane.f32.xlu1 %v487_v48 }
 0x184   : > { %v441_v49 = vpop.f32.mrf.mxu2 }
 0x185   : > { %v1230_v50 = vadd.f32 %v1160_v6, %v441_v49  ;;  %v450_v51 = vpop.xlane.xlu0 %449 }
 0x186   : > { %v496_v52 = vsub.f32 %v400_v8, %v450_v51 }
 0x187   : > { %v490_v53 = vsel %vm447_vm3, %v1230_v50, -inf }
 0x188   : > { %v512_v54 = vmul.f32 1.442695, %v496_v52  ;;  %491 = vmax.xlane.f32.xlu2 %v490_v53 }
 0x18a   : > { %963 = vpow2.f32 %v512_v54 }
 0x18c   : > { %v444_v55 = vpop.f32.mrf.mxu2 }
 0x18d   : > { %v1235_v56 = vadd.f32 %v1160_v6, %v444_v55  ;;  %v453_v57 = vpop.xlane.xlu0 %452 }
 0x18e   : > { %v497_v58 = vsub.f32 %v1165_v11, %v453_v57 }
 0x18f   : > { %v493_v59 = vsel %vm447_vm3, %v1235_v56, -inf }
 0x190   : > { %v1240_v60 = vpop.eup %963  ;;  %v514_v61 = vmul.f32 1.442695, %v497_v58  ;;  %494 = vmax.xlane.f32.xlu0 %v493_v59 }
 0x191   : > { %v544_v62 = vsel %vm447_vm3, %v1240_v60, 0.0 }
 0x192   : > { %965 = vpow2.f32 %v514_v61  ;;  %545 = vadd.xlane.f32.xlu1 %v544_v62 }
 0x195   : > { %v456_v63 = vpop.xlane.xlu1 %455 }
 0x196   : > { %v498_v0 = vsub.f32 %v1170_v14, %v456_v63 }
 0x198   : > { %v1245_v1 = vpop.eup %965  ;;  %v516_v2 = vmul.f32 1.442695, %v498_v0 }
 0x199   : > { %v547_v3 = vsel %vm447_vm3, %v1245_v1, 0.0 }
 0x19a   : > { %967 = vpow2.f32 %v516_v2  ;;  %548 = vadd.xlane.f32.xlu2 %v547_v3 }
 0x19d   : > { %v459_v4 = vpop.xlane.xlu1 %458 }
 0x19e   : > { %v499_v5 = vsub.f32 %v1175_v17, %v459_v4 }
 0x1a0   : > { %v1250_v6 = vpop.eup %967  ;;  %v518_v7 = vmul.f32 1.442695, %v499_v5 }
 0x1a1   : > { %v550_v8 = vsel %vm447_vm3, %v1250_v6, 0.0 }
 0x1a2   : > { %969 = vpow2.f32 %v518_v7  ;;  %551 = vadd.xlane.f32.xlu0 %v550_v8 }
 0x1a5   : > { %v462_v9 = vpop.xlane.xlu2 %461 }
 0x1a6   : > { %v500_v10 = vsub.f32 %v1180_v20, %v462_v9 }
 0x1a8   : > { %v1255_v11 = vpop.eup %969  ;;  %v520_v12 = vmul.f32 1.442695, %v500_v10 }
 0x1a9   : > { %v553_v13 = vsel %vm447_vm3, %v1255_v11, 0.0 }
 0x1aa   : > { %971 = vpow2.f32 %v520_v12  ;;  %554 = vadd.xlane.f32.xlu1 %v553_v13 }
 0x1ad   : > { %v465_v14 = vpop.xlane.xlu2 %464 }
 0x1ae   : > { %v501_v15 = vsub.f32 %v1185_v23, %v465_v14 }
 0x1b0   : > { %v1260_v16 = vpop.eup %971  ;;  %v522_v17 = vmul.f32 1.442695, %v501_v15 }
 0x1b1   : > { %v556_v18 = vsel %vm447_vm3, %v1260_v16, 0.0 }
 0x1b2   : > { %973 = vpow2.f32 %v522_v17  ;;  %557 = vadd.xlane.f32.xlu2 %v556_v18 }
 0x1b5   : > { %v468_v19 = vpop.xlane.xlu0 %467 }
 0x1b6   : > { %v502_v20 = vsub.f32 %v1190_v26, %v468_v19 }
 0x1b8   : > { %v1265_v21 = vpop.eup %973  ;;  %v524_v22 = vmul.f32 1.442695, %v502_v20 }
 0x1b9   : > { %v559_v24 = vsel %vm447_vm3, %v1265_v21, 0.0 }
 0x1ba   : > { %975 = vpow2.f32 %v524_v22  ;;  %560 = vadd.xlane.f32.xlu0 %v559_v24 }
 0x1bd   : > { %v471_v23 = vpop.xlane.xlu1 %470 }
 0x1be   : > { %v503_v25 = vsub.f32 %v1195_v29, %v471_v23 }
 0x1c0   : > { %v1270_v27 = vpop.eup %975  ;;  %v526_v28 = vmul.f32 1.442695, %v503_v25 }
 0x1c1   : > { %v562_v30 = vsel %vm447_vm3, %v1270_v27, 0.0 }
 0x1c2   : > { %977 = vpow2.f32 %v526_v28  ;;  %563 = vadd.xlane.f32.xlu1 %v562_v30 }
 0x1c8   : > { %v1274_v26 = vpop.eup %977 }
 0x1c9   : > { %v565_v31 = vsel %vm447_vm3, %v1274_v26, 0.0 }
 0x1ca   : > { %566 = vadd.xlane.f32.xlu2 %v565_v31 }
 0x1cb   : > { %v474_v33 = vpop.xlane.xlu2 %473 }
 0x1cc   : > { %v504_v34 = vsub.f32 %v1200_v32, %v474_v33 }
 0x1ce   : > { %v528_v36 = vmul.f32 1.442695, %v504_v34 }
 0x1d0   : > { %979 = vpow2.f32 %v528_v36 }
 0x1d3   : > { %v477_v29 = vpop.xlane.xlu0 %476 }
 0x1d4   : > { %v505_v37 = vsub.f32 %v1205_v35, %v477_v29 }
 0x1d6   : > { %v1280_v39 = vpop.eup %979  ;;  %v530_v40 = vmul.f32 1.442695, %v505_v37 }
 0x1d7   : > { %v568_v42 = vsel %vm447_vm3, %v1280_v39, 0.0 }
 0x1d8   : > { %981 = vpow2.f32 %v530_v40  ;;  %569 = vadd.xlane.f32.xlu0 %v568_v42 }
 0x1db   : > { %v480_v43 = vpop.xlane.xlu1 %479 }
 0x1dc   : > { %v506_v45 = vsub.f32 %v1210_v38, %v480_v43 }
 0x1de   : > { %v1285_v46 = vpop.eup %981  ;;  %v532_v48 = vmul.f32 1.442695, %v506_v45 }
 0x1df   : > { %v571_v32 = vsel %vm447_vm3, %v1285_v46, 0.0 }
 0x1e0   : > { %983 = vpow2.f32 %v532_v48  ;;  %572 = vadd.xlane.f32.xlu1 %v571_v32 }
 0x1e3   : > { %v483_v35 = vpop.xlane.xlu2 %482 }
 0x1e4   : > { %v507_v49 = vsub.f32 %v1215_v41, %v483_v35 }
 0x1e6   : > { %v1290_v51 = vpop.eup %983  ;;  %v534_v52 = vmul.f32 1.442695, %v507_v49 }
 0x1e7   : > { %v574_v53 = vsel %vm447_vm3, %v1290_v51, 0.0 }
 0x1e8   : > { %985 = vpow2.f32 %v534_v52  ;;  %575 = vadd.xlane.f32.xlu2 %v574_v53 }
 0x1eb   : > { %v486_v38 = vpop.xlane.xlu0 %485 }
 0x1ec   : > { %v508_v54 = vsub.f32 %v1220_v44, %v486_v38 }
 0x1ee   : > { %v1295_v55 = vpop.eup %985  ;;  %v536_v57 = vmul.f32 1.442695, %v508_v54 }
 0x1ef   : > { %v577_v58 = vsel %vm447_vm3, %v1295_v55, 0.0 }
 0x1f0   : > { %987 = vpow2.f32 %v536_v57  ;;  %578 = vadd.xlane.f32.xlu0 %v577_v58 }
 0x1f3   : > { %v489_v41 = vpop.xlane.xlu1 %488 }
 0x1f4   : > { %v509_v59 = vsub.f32 %v1225_v47, %v489_v41 }
 0x1f6   : > { %v1300_v61 = vpop.eup %987  ;;  %v538_v62 = vmul.f32 1.442695, %v509_v59 }
 0x1f7   : > { %v580_v63 = vsel %vm447_vm3, %v1300_v61, 0.0 }
 0x1f8   : > { %989 = vpow2.f32 %v538_v62  ;;  %581 = vadd.xlane.f32.xlu1 %v580_v63 }
 0x1fb   : > { %v492_v44 = vpop.xlane.xlu2 %491 }
 0x1fc   : > { %v510_v0 = vsub.f32 %v1230_v50, %v492_v44 }
 0x1fe   : > { %v1305_v2 = vpop.eup %989  ;;  %v540_v3 = vmul.f32 1.442695, %v510_v0 }
 0x1ff   : > { %v583_v4 = vsel %vm447_vm3, %v1305_v2, 0.0 }
 0x200   : > { %991 = vpow2.f32 %v540_v3  ;;  %584 = vadd.xlane.f32.xlu2 %v583_v4 }
 0x203   : > { %v495_v47 = vpop.xlane.xlu0 %494 }
 0x204   : > { %v511_v5 = vsub.f32 %v1235_v56, %v495_v47 }
 0x205   : > { %v546_v7 = vpop.xlane.xlu1 %545 }
 0x206   : > { %v1310_v8 = vpop.eup %991  ;;  %v542_v9 = vmul.f32 1.442695, %v511_v5  ;;  %993 = vrcp.f32 %v546_v7  ;;  %v603_v17 = vand.u32 2147483648, %v546_v7  ;;  %v601_v19 = vand.u32 2147483647, %v546_v7 }
 0x207   : > { %v586_v10 = vsel %vm447_vm3, %v1310_v8, 0.0  ;;  %vm597_vm5 = vweird.f32 %v546_v7 }
 0x208   : > { %995 = vpow2.f32 %v542_v9  ;;  %587 = vadd.xlane.f32.xlu0 %v586_v10  ;;  %v604_v24 = vor.u32 1.1754944e-38, %v603_v17  ;;  %vm602_vm7 = vcmp.eq.f32.partialorder %v601_v19, 8.507059e+37 }
 0x20c   : > { %v994_v50 = vpop.eup %993 }
 0x20d   : > { %v593_v12 = vmul.f32 %v994_v50, %v546_v7  ;;  %v549_v13 = vpop.xlane.xlu2 %548  ;;  %vm598_vm4 = vweird.f32 %v994_v50 }
 0x20e   : > { %v1314_v14 = vpop.eup %995  ;;  %997 = vrcp.f32 %v549_v13  ;;  %vm599_vm6 = vmor %vm597_vm5, %vm598_vm4  ;;  %v617_v34 = vand.u32 2147483648, %v549_v13  ;;  %v615_v29 = vand.u32 2147483647, %v549_v13  ;;  %vm611_vm9 = vweird.f32 %v549_v13 }
 0x20f   : > { %v594_v15 = vsub.f32 1.0, %v593_v12  ;;  %v589_v56 = vsel %vm447_vm3, %v1314_v14, 0.0 }
 0x210   : > { %590 = vadd.xlane.f32.xlu1 %v589_v56  ;;  %v618_v42 = vor.u32 1.1754944e-38, %v617_v34  ;;  %vm616_vm11 = vcmp.eq.f32.partialorder %v615_v29, 8.507059e+37 }
 0x211   : > { %v595_v18 = vmul.f32 %v994_v50, %v594_v15 }
 0x213   : > { %v596_v20 = vadd.f32 %v994_v50, %v595_v18 }
 0x214   : > { %v998_v22 = vpop.eup %997 }
 0x215   : > { %v600_v23 = vsel %vm599_vm6, %v994_v50, %v596_v20  ;;  %v607_v25 = vmul.f32 %v998_v22, %v549_v13  ;;  %v552_v28 = vpop.xlane.xlu0 %551  ;;  %vm612_vm8 = vweird.f32 %v998_v22 }
 0x216   : > { %v605_v30 = vsel %vm602_vm7, %v604_v24, %v600_v23  ;;  %999 = vrcp.f32 %v552_v28  ;;  %vm613_vm10 = vmor %vm611_vm9, %vm612_vm8  ;;  %v631_v49 = vand.u32 2147483648, %v552_v28  ;;  %v629_v53 = vand.u32 2147483647, %v552_v28 }
 0x217   : > { %v816_v31 = vmul.f32 %v1240_v60, %v605_v30  ;;  %v608_v33 = vsub.f32 1.0, %v607_v25  ;;  %vm625_vm13 = vweird.f32 %v552_v28 }
 0x218   : > { %v632_v57 = vor.u32 1.1754944e-38, %v631_v49  ;;  %vm630_vm15 = vcmp.eq.f32.partialorder %v629_v53, 8.507059e+37 }
 0x219   : > { %832 = vst.msk [vmem:[%s1323_s8] sm:$0xff] %vm447_vm3, %v816_v31  ;;  %v609_v36 = vmul.f32 %v998_v22, %v608_v33 }
 0x21b   : > { %v610_v37 = vadd.f32 %v998_v22, %v609_v36 }
 0x21c   : > { %v1000_v40 = vpop.eup %999 }
 0x21d   : > { %v614_v43 = vsel %vm613_vm10, %v998_v22, %v610_v37  ;;  %v621_v45 = vmul.f32 %v1000_v40, %v552_v28  ;;  %v555_v48 = vpop.xlane.xlu1 %554  ;;  %vm626_vm12 = vweird.f32 %v1000_v40 }
 0x21e   : > { %v619_v32 = vsel %vm616_vm11, %v618_v42, %v614_v43  ;;  %1001 = vrcp.f32 %v555_v48  ;;  %vm627_vm14 = vmor %vm625_vm13, %vm626_vm12  ;;  %v645_v44 = vand.u32 2147483648, %v555_v48  ;;  %v643_v3 = vand.u32 2147483647, %v555_v48 }
 0x21f   : > { %v817_v60 = vmul.f32 %v1245_v1, %v619_v32  ;;  %v622_v35 = vsub.f32 1.0, %v621_v45  ;;  %vm639_vm1 = vweird.f32 %v555_v48 }
 0x220   : > { %v646_v5 = vor.u32 1.1754944e-38, %v645_v44  ;;  %vm644_vm4 = vcmp.eq.f32.partialorder %v643_v3, 8.507059e+37 }
 0x221   : > { %833 = vst.msk [vmem:[%s1323_s8 + $0x8] sm:$0xff] %vm447_vm3, %v817_v60  ;;  %v623_v52 = vmul.f32 %v1000_v40, %v622_v35 }
 0x223   : > { %v624_v38 = vadd.f32 %v1000_v40, %v623_v52 }
 0x224   : > { %v1002_v54 = vpop.eup %1001 }
 0x225   : > { %v628_v58 = vsel %vm627_vm14, %v1000_v40, %v624_v38  ;;  %v635_v41 = vmul.f32 %v1002_v54, %v555_v48  ;;  %v558_v59 = vpop.xlane.xlu2 %557  ;;  %vm640_vm0 = vweird.f32 %v1002_v54 }
 0x226   : > { %v633_v62 = vsel %vm630_vm15, %v632_v57, %v628_v58  ;;  %1003 = vrcp.f32 %v558_v59  ;;  %vm641_vm2 = vmor %vm639_vm1, %vm640_vm0  ;;  %v659_v13 = vand.u32 2147483648, %v558_v59  ;;  %v657_v56 = vand.u32 2147483647, %v558_v59 }
 0x227   : > { %v818_v1 = vmul.f32 %v1250_v6, %v633_v62  ;;  %v636_v63 = vsub.f32 1.0, %v635_v41  ;;  %vm653_vm6 = vweird.f32 %v558_v59 }
 0x228   : > { %v660_v19 = vor.u32 1.1754944e-38, %v659_v13  ;;  %vm658_vm8 = vcmp.eq.f32.partialorder %v657_v56, 8.507059e+37 }
 0x229   : > { %834 = vst.msk [vmem:[%s1323_s8 + $0x10] sm:$0xff] %vm447_vm3, %v818_v1  ;;  %v637_v0 = vmul.f32 %v1002_v54, %v636_v63 }
 0x22b   : > { %v638_v4 = vadd.f32 %v1002_v54, %v637_v0 }
 0x22c   : > { %v1004_v47 = vpop.eup %1003 }
 0x22d   : > { %v642_v7 = vsel %vm641_vm2, %v1002_v54, %v638_v4  ;;  %v649_v9 = vmul.f32 %v1004_v47, %v558_v59  ;;  %v561_v10 = vpop.xlane.xlu0 %560  ;;  %vm654_vm5 = vweird.f32 %v1004_v47 }
 0x22e   : > { %v647_v50 = vsel %vm644_vm4, %v646_v5, %v642_v7  ;;  %1005 = vrcp.f32 %v561_v10  ;;  %vm655_vm7 = vmor %vm653_vm6, %vm654_vm5  ;;  %v673_v28 = vand.u32 2147483648, %v561_v10  ;;  %v671_v31 = vand.u32 2147483647, %v561_v10 }
 0x22f   : > { %v819_v6 = vmul.f32 %v1255_v11, %v647_v50  ;;  %v650_v12 = vsub.f32 1.0, %v649_v9  ;;  %vm667_vm10 = vweird.f32 %v561_v10 }
 0x230   : > { %v674_v36 = vor.u32 1.1754944e-38, %v673_v28  ;;  %vm672_vm12 = vcmp.eq.f32.partialorder %v671_v31, 8.507059e+37 }
 0x231   : > { %835 = vst.msk [vmem:[%s1323_s8 + $0x18] sm:$0xff] %vm447_vm3, %v819_v6  ;;  %v651_v15 = vmul.f32 %v1004_v47, %v650_v12 }
 0x233   : > { %v652_v17 = vadd.f32 %v1004_v47, %v651_v15 }
 0x234   : > { %v1006_v18 = vpop.eup %1005 }
 0x235   : > { %v656_v20 = vsel %vm655_vm7, %v1004_v47, %v652_v17  ;;  %v663_v22 = vmul.f32 %v1006_v18, %v561_v10  ;;  %v564_v24 = vpop.xlane.xlu1 %563  ;;  %vm668_vm9 = vweird.f32 %v1006_v18 }
 0x236   : > { %v661_v23 = vsel %vm658_vm8, %v660_v19, %v656_v20  ;;  %1007 = vrcp.f32 %v564_v24  ;;  %vm669_vm11 = vmor %vm667_vm10, %vm668_vm9  ;;  %v687_v45 = vand.u32 2147483648, %v564_v24  ;;  %v685_v32 = vand.u32 2147483647, %v564_v24 }
 0x237   : > { %v820_v11 = vmul.f32 %v1260_v16, %v661_v23  ;;  %v664_v25 = vsub.f32 1.0, %v663_v22  ;;  %vm681_vm14 = vweird.f32 %v564_v24 }
 0x238   : > { %v688_v49 = vor.u32 1.1754944e-38, %v687_v45  ;;  %vm686_vm0 = vcmp.eq.f32.partialorder %v685_v32, 8.507059e+37 }
 0x239   : > { %836 = vst.msk [vmem:[%s1323_s8 + $0x20] sm:$0xff] %vm447_vm3, %v820_v11  ;;  %v665_v30 = vmul.f32 %v1006_v18, %v664_v25 }
 0x23b   : > { %v666_v33 = vadd.f32 %v1006_v18, %v665_v30 }
 0x23c   : > { %v1008_v34 = vpop.eup %1007 }
 0x23d   : > { %v670_v29 = vsel %vm669_vm11, %v1006_v18, %v666_v33  ;;  %v677_v37 = vmul.f32 %v1008_v34, %v564_v24  ;;  %v567_v40 = vpop.xlane.xlu2 %566  ;;  %vm682_vm13 = vweird.f32 %v1008_v34 }
 0x23e   : > { %v675_v42 = vsel %vm672_vm12, %v674_v36, %v670_v29  ;;  %1009 = vrcp.f32 %v567_v40  ;;  %vm683_vm15 = vmor %vm681_vm14, %vm682_vm13  ;;  %v701_v57 = vand.u32 2147483648, %v567_v40  ;;  %v699_v41 = vand.u32 2147483647, %v567_v40 }
 0x23f   : > { %v821_v16 = vmul.f32 %v1265_v21, %v675_v42  ;;  %v678_v43 = vsub.f32 1.0, %v677_v37  ;;  %vm695_vm2 = vweird.f32 %v567_v40 }
 0x240   : > { %v702_v1 = vor.u32 1.1754944e-38, %v701_v57  ;;  %vm700_vm5 = vcmp.eq.f32.partialorder %v699_v41, 8.507059e+37 }
 0x241   : > { %837 = vst.msk [vmem:[%s1323_s8 + $0x28] sm:$0xff] %vm447_vm3, %v821_v16  ;;  %v679_v48 = vmul.f32 %v1008_v34, %v678_v43 }
 0x243   : > { %v680_v60 = vadd.f32 %v1008_v34, %v679_v48 }
 0x244   : > { %v1010_v35 = vpop.eup %1009 }
 0x245   : > { %v684_v52 = vsel %vm683_vm15, %v1008_v34, %v680_v60  ;;  %v691_v53 = vmul.f32 %v1010_v35, %v567_v40  ;;  %vm696_vm1 = vweird.f32 %v1010_v35 }
 0x246   : > { %v689_v38 = vsel %vm686_vm0, %v688_v49, %v684_v52  ;;  %vm697_vm4 = vmor %vm695_vm2, %vm696_vm1 }
 0x247   : > { %v822_v54 = vmul.f32 %v1270_v27, %v689_v38  ;;  %v692_v21 = vsub.f32 1.0, %v691_v53 }
 0x249   : > { %838 = vst.msk [vmem:[%s1323_s8 + $0x30] sm:$0xff] %vm447_vm3, %v822_v54  ;;  %v693_v58 = vmul.f32 %v1010_v35, %v692_v21 }
 0x24b   : > { %v694_v59 = vadd.f32 %v1010_v35, %v693_v58  ;;  %v570_v62 = vpop.xlane.xlu0 %569 }
 0x24c   : > { %1011 = vrcp.f32 %v570_v62  ;;  %v715_v5 = vand.u32 2147483648, %v570_v62  ;;  %v713_v9 = vand.u32 2147483647, %v570_v62  ;;  %vm709_vm7 = vweird.f32 %v570_v62 }
 0x24d   : > { %v698_v63 = vsel %vm697_vm4, %v1010_v35, %v694_v59 }
 0x24e   : > { %v703_v44 = vsel %vm700_vm5, %v702_v1, %v698_v63  ;;  %v716_v6 = vor.u32 1.1754944e-38, %v715_v5  ;;  %vm714_vm9 = vcmp.eq.f32.partialorder %v713_v9, 8.507059e+37 }
 0x24f   : > { %v823_v0 = vmul.f32 %v1274_v26, %v703_v44 }
 0x251   : > { %839 = vst.msk [vmem:[%s1323_s8 + $0x38] sm:$0xff] %vm447_vm3, %v823_v0 }
 0x252   : > { %v1012_v27 = vpop.eup %1011 }
 0x253   : > { %v705_v3 = vmul.f32 %v1012_v27, %v570_v62  ;;  %v573_v4 = vpop.xlane.xlu1 %572  ;;  %vm710_vm6 = vweird.f32 %v1012_v27 }
 0x254   : > { %1013 = vrcp.f32 %v573_v4  ;;  %vm711_vm8 = vmor %vm709_vm7, %vm710_vm6  ;;  %v729_v18 = vand.u32 2147483648, %v573_v4  ;;  %v727_v20 = vand.u32 2147483647, %v573_v4  ;;  %vm723_vm11 = vweird.f32 %v573_v4 }
 0x255   : > { %v706_v47 = vsub.f32 1.0, %v705_v3 }
 0x256   : > { %v730_v23 = vor.u32 1.1754944e-38, %v729_v18  ;;  %vm728_vm13 = vcmp.eq.f32.partialorder %v727_v20, 8.507059e+37 }
 0x257   : > { %v707_v7 = vmul.f32 %v1012_v27, %v706_v47 }
 0x259   : > { %v708_v10 = vadd.f32 %v1012_v27, %v707_v7 }
 0x25a   : > { %v1014_v50 = vpop.eup %1013 }
 0x25b   : > { %v712_v12 = vsel %vm711_vm8, %v1012_v27, %v708_v10  ;;  %v719_v26 = vmul.f32 %v1014_v50, %v573_v4  ;;  %v576_v13 = vpop.xlane.xlu2 %575  ;;  %vm724_vm10 = vweird.f32 %v1014_v50 }
 0x25c   : > { %v717_v15 = vsel %vm714_vm9, %v716_v6, %v712_v12  ;;  %1015 = vrcp.f32 %v576_v13  ;;  %vm725_vm12 = vmor %vm723_vm11, %vm724_vm10  ;;  %v743_v33 = vand.u32 2147483648, %v576_v13  ;;  %v741_v36 = vand.u32 2147483647, %v576_v13 }
 0x25d   : > { %v824_v56 = vmul.f32 %v1280_v39, %v717_v15  ;;  %v720_v17 = vsub.f32 1.0, %v719_v26  ;;  %vm737_vm15 = vweird.f32 %v576_v13 }
 0x25e   : > { %v744_v40 = vor.u32 1.1754944e-38, %v743_v33  ;;  %vm742_vm1 = vcmp.eq.f32.partialorder %v741_v36, 8.507059e+37 }
 0x25f   : > { %840 = vst.msk [vmem:[%s1323_s8 + $0x40] sm:$0xff] %vm447_vm3, %v824_v56  ;;  %v721_v19 = vmul.f32 %v1014_v50, %v720_v17 }
 0x261   : > { %v722_v22 = vadd.f32 %v1014_v50, %v721_v19 }
 0x262   : > { %v1016_v24 = vpop.eup %1015 }
 0x263   : > { %v726_v11 = vsel %vm725_vm12, %v1014_v50, %v722_v22  ;;  %v733_v25 = vmul.f32 %v1016_v24, %v576_v13  ;;  %v579_v28 = vpop.xlane.xlu0 %578  ;;  %vm738_vm14 = vweird.f32 %v1016_v24 }
 0x264   : > { %v731_v30 = vsel %vm728_vm13, %v730_v23, %v726_v11  ;;  %1017 = vrcp.f32 %v579_v28  ;;  %vm739_vm0 = vmor %vm737_vm15, %vm738_vm14  ;;  %v757_v32 = vand.u32 2147483648, %v579_v28  ;;  %v755_v35 = vand.u32 2147483647, %v579_v28 }
 0x265   : > { %v825_v39 = vmul.f32 %v1285_v46, %v731_v30  ;;  %v734_v31 = vsub.f32 1.0, %v733_v25  ;;  %vm751_vm4 = vweird.f32 %v579_v28 }
 0x266   : > { %v758_v53 = vor.u32 1.1754944e-38, %v757_v32  ;;  %vm756_vm6 = vcmp.eq.f32.partialorder %v755_v35, 8.507059e+37 }
 0x267   : > { %841 = vst.msk [vmem:[%s1323_s8 + $0x48] sm:$0xff] %vm447_vm3, %v825_v39  ;;  %v735_v34 = vmul.f32 %v1016_v24, %v734_v31 }
 0x269   : > { %v736_v29 = vadd.f32 %v1016_v24, %v735_v34 }
 0x26a   : > { %v1018_v37 = vpop.eup %1017 }
 0x26b   : > { %v740_v42 = vsel %vm739_vm0, %v1016_v24, %v736_v29  ;;  %v747_v16 = vmul.f32 %v1018_v37, %v579_v28  ;;  %v582_v43 = vpop.xlane.xlu1 %581  ;;  %vm752_vm2 = vweird.f32 %v1018_v37 }
 0x26c   : > { %v745_v45 = vsel %vm742_vm1, %v744_v40, %v740_v42  ;;  %1019 = vrcp.f32 %v582_v43  ;;  %vm753_vm5 = vmor %vm751_vm4, %vm752_vm2  ;;  %v771_v41 = vand.u32 2147483648, %v582_v43  ;;  %v769_v62 = vand.u32 2147483647, %v582_v43 }
 0x26d   : > { %v826_v46 = vmul.f32 %v1290_v51, %v745_v45  ;;  %v748_v48 = vsub.f32 1.0, %v747_v16  ;;  %vm765_vm8 = vweird.f32 %v582_v43 }
 0x26e   : > { %v772_v44 = vor.u32 1.1754944e-38, %v771_v41  ;;  %vm770_vm10 = vcmp.eq.f32.partialorder %v769_v62, 8.507059e+37 }
 0x26f   : > { %842 = vst.msk [vmem:[%s1323_s8 + $0x50] sm:$0xff] %vm447_vm3, %v826_v46  ;;  %v749_v60 = vmul.f32 %v1018_v37, %v748_v48 }
 0x271   : > { %v750_v49 = vadd.f32 %v1018_v37, %v749_v60 }
 0x272   : > { %v1020_v52 = vpop.eup %1019 }
 0x273   : > { %v754_v38 = vsel %vm753_vm5, %v1018_v37, %v750_v49  ;;  %v761_v54 = vmul.f32 %v1020_v52, %v582_v43  ;;  %v585_v21 = vpop.xlane.xlu2 %584  ;;  %vm766_vm7 = vweird.f32 %v1020_v52 }
 0x274   : > { %v759_v57 = vsel %vm756_vm6, %v758_v53, %v754_v38  ;;  %1021 = vrcp.f32 %v585_v21  ;;  %vm767_vm9 = vmor %vm765_vm8, %vm766_vm7  ;;  %v785_v5 = vand.u32 2147483648, %v585_v21  ;;  %v783_v9 = vand.u32 2147483647, %v585_v21 }
 0x275   : > { %v827_v51 = vmul.f32 %v1295_v55, %v759_v57  ;;  %v762_v58 = vsub.f32 1.0, %v761_v54  ;;  %vm779_vm12 = vweird.f32 %v585_v21 }
 0x276   : > { %v786_v6 = vor.u32 1.1754944e-38, %v785_v5  ;;  %vm784_vm14 = vcmp.eq.f32.partialorder %v783_v9, 8.507059e+37 }
 0x277   : > { %843 = vst.msk [vmem:[%s1323_s8 + $0x58] sm:$0xff] %vm447_vm3, %v827_v51  ;;  %v763_v59 = vmul.f32 %v1020_v52, %v762_v58 }
 0x279   : > { %v764_v1 = vadd.f32 %v1020_v52, %v763_v59 }
 0x27a   : > { %v1022_v63 = vpop.eup %1021 }
 0x27b   : > { %v768_v0 = vsel %vm767_vm9, %v1020_v52, %v764_v1  ;;  %v775_v27 = vmul.f32 %v1022_v63, %v585_v21  ;;  %v588_v3 = vpop.xlane.xlu0 %587  ;;  %vm780_vm11 = vweird.f32 %v1022_v63 }
 0x27c   : > { %v773_v4 = vsel %vm770_vm10, %v772_v44, %v768_v0  ;;  %1023 = vrcp.f32 %v588_v3  ;;  %vm781_vm13 = vmor %vm779_vm12, %vm780_vm11  ;;  %v799_v17 = vand.u32 2147483648, %v588_v3  ;;  %v797_v19 = vand.u32 2147483647, %v588_v3 }
 0x27d   : > { %v828_v55 = vmul.f32 %v1300_v61, %v773_v4  ;;  %v776_v47 = vsub.f32 1.0, %v775_v27  ;;  %vm793_vm0 = vweird.f32 %v588_v3 }
 0x27e   : > { %v800_v24 = vor.u32 1.1754944e-38, %v799_v17  ;;  %vm798_vm2 = vcmp.eq.f32.partialorder %v797_v19, 8.507059e+37 }
 0x27f   : > { %844 = vst.msk [vmem:[%s1323_s8 + $0x60] sm:$0xff] %vm447_vm3, %v828_v55  ;;  %v777_v7 = vmul.f32 %v1022_v63, %v776_v47 }
 0x281   : > { %v778_v10 = vadd.f32 %v1022_v63, %v777_v7 }
 0x282   : > { %v1024_v50 = vpop.eup %1023 }
 0x283   : > { %v782_v12 = vsel %vm781_vm13, %v1022_v63, %v778_v10  ;;  %v789_v26 = vmul.f32 %v1024_v50, %v588_v3  ;;  %v591_v13 = vpop.xlane.xlu1 %590  ;;  %vm794_vm15 = vweird.f32 %v1024_v50 }
 0x284   : > { %v787_v15 = vsel %vm784_vm14, %v786_v6, %v782_v12  ;;  %1025 = vrcp.f32 %v591_v13  ;;  %vm795_vm1 = vmor %vm793_vm0, %vm794_vm15  ;;  %v813_v30 = vand.u32 2147483648, %v591_v13  ;;  %v811_v31 = vand.u32 2147483647, %v591_v13 }
 0x285   : > { %v829_v61 = vmul.f32 %v1305_v2, %v787_v15  ;;  %v790_v56 = vsub.f32 1.0, %v789_v26  ;;  %vm807_vm5 = vweird.f32 %v591_v13 }
 0x286   : > { %v814_v34 = vor.u32 1.1754944e-38, %v813_v30  ;;  %vm812_vm7 = vcmp.eq.f32.partialorder %v811_v31, 8.507059e+37 }
 0x287   : > { %845 = vst.msk [vmem:[%s1323_s8 + $0x68] sm:$0xff] %vm447_vm3, %v829_v61  ;;  %v791_v18 = vmul.f32 %v1024_v50, %v790_v56 }
 0x289   : > { %v792_v20 = vadd.f32 %v1024_v50, %v791_v18 }
 0x28a   : > { %v1026_v22 = vpop.eup %1025 }
 0x28b   : > { %v796_v23 = vsel %vm795_vm1, %v1024_v50, %v792_v20  ;;  %v803_v11 = vmul.f32 %v1026_v22, %v591_v13  ;;  %vm808_vm4 = vweird.f32 %v1026_v22 }
 0x28c   : > { %v801_v25 = vsel %vm798_vm2, %v800_v24, %v796_v23  ;;  %vm809_vm6 = vmor %vm807_vm5, %vm808_vm4 }
 0x28d   : > { %v830_v2 = vmul.f32 %v1310_v8, %v801_v25  ;;  %v804_v28 = vsub.f32 1.0, %v803_v11 }
 0x28f   : > { %846 = vst.msk [vmem:[%s1323_s8 + $0x70] sm:$0xff] %vm447_vm3, %v830_v2  ;;  %v805_v39 = vmul.f32 %v1026_v22, %v804_v28 }
 0x291   : > { %v806_v33 = vadd.f32 %v1026_v22, %v805_v39 }
 0x293   : > { %v810_v36 = vsel %vm809_vm6, %v1026_v22, %v806_v33 }
 0x294   : > { %v815_v29 = vsel %vm812_vm7, %v814_v34, %v810_v36 }
 0x295   : > { %v831_v37 = vmul.f32 %v1314_v14, %v815_v29 }
 0x297   : > { %847 = vst.msk [vmem:[%s1323_s8 + $0x78] sm:$0xff] %vm447_vm3, %v831_v37 }
 0x298 PF: > { %s13_s12 = sadd.s32 1, %s1033_s12  }
 0x299   : > { %p10_p4 = scmp.ge.s32.totalorder %s13_s12, 4  }
 0x29b   :  { %12 = sbr.rel (!%p10_p4) target bundleno = 1 (0x1), region = 62 }

</bundles_post_ra>
